<compile_context>
chip_gen: v6e
topology: v6e:2x2x1
jax: 0.10.0
libtpu: 0.0.40
codegen_flags: <defaults>
</compile_context>

<pallas_src>
import functools

import jax
import jax.numpy as jnp
from jax.experimental import pallas as pl
from jax.experimental.pallas import tpu as pltpu


# --------------------------------------------------------------------------
# Pass 1: per-tile additive-attention scores e = sum(tanh(bias + word@W2) * v, -1)
# --------------------------------------------------------------------------
def _scores_kernel(bias_ref, vrow_ref, w2_ref, word_ref, e_ref, *, precision):
    word = word_ref[...]                      # [TILE_N, d2] (native dtype)
    # hidden = tanh(typ@W1 + word@W2); typ@W1 precomputed as `bias` (f32, [1, d3]).
    h = jnp.dot(word, w2_ref[...],
                preferred_element_type=jnp.float32,
                precision=precision) + bias_ref[...]
    hidden = jnp.tanh(h)                      # f32 -> EUP tanh, f32 VPU math
    # e = hidden @ v as VPU mul + XLU lane reduce (avoid 1-wide MXU matmul).
    e_ref[...] = jnp.sum(hidden * vrow_ref[...], axis=-1, keepdims=True)  # [TILE_N, 1] f32


# --------------------------------------------------------------------------
# Pass 2: out = word * a   (a = softmax weight per token, broadcast over d2)
# --------------------------------------------------------------------------
def _scale_kernel(word_ref, a_ref, out_ref):
    out_ref[...] = (word_ref[...].astype(jnp.float32) * a_ref[...]).astype(out_ref.dtype)


def attention_forward(typ_embed, word_embed, w1, w2, v, *,
                      tile_n=1024,
                      donate_word_embed=False,
                      matmul_precision=None,
                      vmem_limit_bytes=32 * 1024 * 1024):
    """typ_embed: [1, d1], word_embed: [N, d2], w1: [d1, d3], w2: [d2, d3], v: [d3, 1]."""
    n, d2 = word_embed.shape
    d1 = typ_embed.shape[-1]
    d3 = w2.shape[-1]
    itemsize = jnp.dtype(word_embed.dtype).itemsize
    w_itemsize = jnp.dtype(w2.dtype).itemsize

    # Hoisted N-independent term: bias = typ @ W1  -> [1, d3] (f32). W1 never hits VMEM.
    bias = jnp.dot(typ_embed.reshape(1, d1).astype(jnp.float32),
                   w1.astype(jnp.float32),
                   preferred_element_type=jnp.float32)
    v_row = v.reshape(1, d3).astype(jnp.float32)

    # No padding of word_embed: Pallas clips the ragged last block (partial reads,
    # dropped out-of-range output rows).  Clamp the tile so small N doesn't
    # over-allocate VMEM; keep it a multiple of 8 (sublane granularity).
    tile_n = min(tile_n, ((n + 7) // 8) * 8)
    num_tiles = pl.cdiv(n, tile_n)

    compiler_params = pltpu.CompilerParams(
        dimension_semantics=("parallel",),
        vmem_limit_bytes=vmem_limit_bytes,
    )

    # ---------------- pass 1: streamed score computation ----------------
    e = pl.pallas_call(
        functools.partial(_scores_kernel, precision=matmul_precision),
        out_shape=jax.ShapeDtypeStruct((n, 1), jnp.float32),
        grid_spec=pltpu.PrefetchScalarGridSpec(
            num_scalar_prefetch=0,
            grid=(num_tiles,),
            in_specs=[
                pl.BlockSpec((1, d3), lambda i: (0, 0)),        # bias (resident)
                pl.BlockSpec((1, d3), lambda i: (0, 0)),        # v row (resident)
                pl.BlockSpec((d2, d3), lambda i: (0, 0)),       # W2 (resident)
                pl.BlockSpec((tile_n, d2), lambda i: (i, 0)),   # word tile (pipelined)
            ],
            out_specs=pl.BlockSpec((tile_n, 1), lambda i: (i, 0)),
        ),
        compiler_params=compiler_params,
        cost_estimate=pl.CostEstimate(
            flops=2 * n * d2 * d3 + 3 * n * d3,
            transcendentals=n * d3,
            bytes_accessed=n * d2 * itemsize + d2 * d3 * w_itemsize + n * 4,
        ),
    )(bias, v_row, w2, word_embed)

    # ------------- global softmax over tokens (tiny: 4*N bytes) -------------
    # e contains only the N real scores (padded rows never reach HBM), so the
    # global max is exact and no -inf masking is required.
    a = jax.nn.softmax(e, axis=0)                 # [n, 1] f32

    # ---------------- pass 2: streamed scaling of word_embed ----------------
    alias_kwargs = {"input_output_aliases": {0: 0}} if donate_word_embed else {}
    out = pl.pallas_call(
        _scale_kernel,
        out_shape=jax.ShapeDtypeStruct((n, d2), word_embed.dtype),
        grid_spec=pltpu.PrefetchScalarGridSpec(
            num_scalar_prefetch=0,
            grid=(num_tiles,),
            in_specs=[
                pl.BlockSpec((tile_n, d2), lambda i: (i, 0)),   # word tile
                pl.BlockSpec((tile_n, 1), lambda i: (i, 0)),    # softmax weight tile
            ],
            out_specs=pl.BlockSpec((tile_n, d2), lambda i: (i, 0)),
        ),
        compiler_params=compiler_params,
        cost_estimate=pl.CostEstimate(
            flops=n * d2,
            transcendentals=0,
            bytes_accessed=2 * n * d2 * itemsize + n * 4,
        ),
        **alias_kwargs,
    )(word_embed, a)

    return out


def reference_forward(typ_embed, word_embed, w1, w2, v):
    hidden = jnp.tanh(typ_embed @ w1 + word_embed @ w2)
    e = hidden @ v                                 # [N, 1]
    a = jax.nn.softmax(e, axis=0)                  # softmax over dim 0 (tokens)
    return word_embed * a                          # == (word_embed.T * a.T).T


if __name__ == "__main__":
    # Small shapes consistent with the module: N tokens, dims d1/d2/d3.
    # d2, d3 chosen as multiples of 128 (lane-dense stores); N deliberately not a
    # multiple of the tile to exercise the ragged-last-tile (no-pad) path.
    N, d1, d2, d3 = 500, 64, 256, 128

    key = jax.random.PRNGKey(0)
    k_typ, k_word, k_w1, k_w2, k_v = jax.random.split(key, 5)

    typ_embed = jax.random.normal(k_typ, (1, d1), dtype=jnp.float32)
    word_embed = jax.random.normal(k_word, (N, d2), dtype=jnp.float32)
    # Deterministic synthetic parameters (no checkpoint load).
    w1 = jax.random.normal(k_w1, (d1, d3), dtype=jnp.float32) * 0.1
    w2 = jax.random.normal(k_w2, (d2, d3), dtype=jnp.float32) * 0.1
    v = jax.random.normal(k_v, (d3, 1), dtype=jnp.float32) * 0.1

    ref = reference_forward(typ_embed, word_embed, w1, w2, v)

    # (a) Multi-tile path: one full 256-row tile + one ragged 244-row tile.
    out = attention_forward(typ_embed, word_embed, w1, w2, v, tile_n=256)
    out = jax.block_until_ready(out)
    assert out.shape == (N, d2)
    rel_err = jnp.max(jnp.abs(out - ref)) / (jnp.max(jnp.abs(ref)) + 1e-12)
    assert float(rel_err) < 2e-3, f"mismatch vs pure-JAX reference: rel_err={float(rel_err)}"

    # (b) Default large-tile path: tile clamps to ceil(N/8)*8 -> single partial block.
    out2 = attention_forward(typ_embed, word_embed, w1, w2, v)
    out2 = jax.block_until_ready(out2)
    rel_err2 = jnp.max(jnp.abs(out2 - ref)) / (jnp.max(jnp.abs(ref)) + 1e-12)
    assert float(rel_err2) < 2e-3, f"mismatch (default tile): rel_err={float(rel_err2)}"

    print("KERNEL_OK")
</pallas_src>

<mosaic_0001>
module attributes {stable_mosaic.version = 11 : i64} {
  func.func @_scores_kernel(%arg0: i32, %arg1: memref<1x128xf32, #tpu.memory_space<vmem>>, %arg2: memref<1x128xf32, #tpu.memory_space<vmem>>, %arg3: memref<256x128xf32, #tpu.memory_space<vmem>>, %arg4: memref<256x256xf32, #tpu.memory_space<vmem>>, %arg5: memref<256x1xf32, #tpu.memory_space<vmem>>) attributes {dimension_semantics = [#tpu.dimension_semantics<parallel>], iteration_bounds = array<i64: 2>, scalar_prefetch = 0 : i64, scratch_operands = 0 : i64, tpu.core_type = #tpu.core_type<tc>, window_params = [{pipeline_mode = #tpu.pipeline_mode<synchronous>, transform_indices = @transform_0, window_bounds = array<i64: 1, 128>}, {pipeline_mode = #tpu.pipeline_mode<synchronous>, transform_indices = @transform_1, window_bounds = array<i64: 1, 128>}, {pipeline_mode = #tpu.pipeline_mode<synchronous>, transform_indices = @transform_2, window_bounds = array<i64: 256, 128>}, {transform_indices = @transform_3, window_bounds = array<i64: 256, 256>}, {transform_indices = @transform_4, window_bounds = array<i64: 256, 1>}]} {
    %c0 = arith.constant 0 : index
    %c0_0 = arith.constant 0 : index
    %0 = vector.load %arg4[%c0, %c0_0] : memref<256x256xf32, #tpu.memory_space<vmem>>, vector<256x256xf32>
    %c0_1 = arith.constant 0 : index
    %c0_2 = arith.constant 0 : index
    %1 = vector.load %arg3[%c0_1, %c0_2] : memref<256x128xf32, #tpu.memory_space<vmem>>, vector<256x128xf32>
    %cst = arith.constant dense<0.000000e+00> : vector<256x128xf32>
    %2 = tpu.matmul %0, %1, %cst {dimension_numbers = #tpu.dot_dimension_numbers<[1], [0], [0], [1], [0, 0, 1, 1], [], []>} : vector<256x256xf32>, vector<256x128xf32>, vector<256x128xf32> -> vector<256x128xf32>
    %c0_3 = arith.constant 0 : index
    %c0_4 = arith.constant 0 : index
    %3 = vector.load %arg1[%c0_3, %c0_4] : memref<1x128xf32, #tpu.memory_space<vmem>>, vector<1x128xf32>
    %4 = vector.broadcast %3 : vector<1x128xf32> to vector<256x128xf32>
    %5 = arith.addf %2, %4 : vector<256x128xf32>
    %6 = math.tanh %5 : vector<256x128xf32>
    %c0_5 = arith.constant 0 : index
    %c0_6 = arith.constant 0 : index
    %7 = vector.load %arg2[%c0_5, %c0_6] : memref<1x128xf32, #tpu.memory_space<vmem>>, vector<1x128xf32>
    %8 = vector.broadcast %7 : vector<1x128xf32> to vector<256x128xf32>
    %9 = arith.mulf %6, %8 : vector<256x128xf32>
    %cst_7 = arith.constant dense<0.000000e+00> : vector<256xf32>
    %10 = vector.multi_reduction <add>, %9, %cst_7 [1] : vector<256x128xf32> to vector<256xf32>
    %11 = vector.shape_cast %10 : vector<256xf32> to vector<256x1xf32>
    %c0_8 = arith.constant 0 : index
    %c0_9 = arith.constant 0 : index
    %12 = vector.load %arg5[%c0_8, %c0_9] : memref<256x1xf32, #tpu.memory_space<vmem>>, vector<256x1xf32>
    tpu.vector_store %arg5[%c0_8, %c0_9], %11 {strides = array<i32>} : memref<256x1xf32, #tpu.memory_space<vmem>>, vector<256x1xf32>,
    return
  }
  func.func @transform_0(%arg0: i32) -> (i32, i32) {
    %c0_i32 = arith.constant 0 : i32
    %c0_i32_0 = arith.constant 0 : i32
    %c0_i32_1 = arith.constant 0 : i32
    return %c0_i32, %c0_i32_0 : i32, i32
  }
  func.func @transform_1(%arg0: i32) -> (i32, i32) {
    %c0_i32 = arith.constant 0 : i32
    %c0_i32_0 = arith.constant 0 : i32
    %c0_i32_1 = arith.constant 0 : i32
    return %c0_i32, %c0_i32_0 : i32, i32
  }
  func.func @transform_2(%arg0: i32) -> (i32, i32) {
    %c0_i32 = arith.constant 0 : i32
    %c0_i32_0 = arith.constant 0 : i32
    %c0_i32_1 = arith.constant 0 : i32
    return %c0_i32, %c0_i32_0 : i32, i32
  }
  func.func @transform_3(%arg0: i32) -> (i32, i32) {
    %c0_i32 = arith.constant 0 : i32
    %c0_i32_0 = arith.constant 0 : i32
    return %arg0, %c0_i32 : i32, i32
  }
  func.func @transform_4(%arg0: i32) -> (i32, i32) {
    %c0_i32 = arith.constant 0 : i32
    %c0_i32_0 = arith.constant 0 : i32
    return %arg0, %c0_i32 : i32, i32
  }
}

</mosaic_0001>

<bundles_post_ra>
// kernel: tpu_custom_call.1
= control target key start
LH: loop header
LB: loop body
LE: loop exit
PB: predicated region body
PF: predicated region fallthrough
CT: control target
= control target key end

     0   :  { %9 = vsyncpa [#allocation3], 0  ;;  %s2192_s0 = inlined_call_operand.hbm [shape: f32[1,128], index: 0, kind: input, shape index: {}]   ;;  %s2193_s1 = inlined_call_operand.vmem [shape: f32[1,128], index: 1, kind: input, shape index: {}]   ;;  %s2194_s2 = inlined_call_operand.hbm [shape: f32[256,128], index: 2, kind: input, shape index: {}]   ;;  %s2195_s3 = inlined_call_operand.hbm [shape: f32[500,256], index: 3, kind: input, shape index: {}]   ;;  %s2196_s4 = inlined_call_operand.vmem [shape: f32[500,1], index: 4, kind: output, shape index: {}]  }
   0x1   :  { %10 = vsyncpa [#allocation5], 0  ;;  %s1636_s15 = smov 0   ;;  %s1638_s16 = smov 0  }
   0x2   :  { %s1640_s17 = smov 0   ;;  %s1642_s18 = smov 0  }
   0x3 LB: > { %s1655_s19 = sadd.s32 4294967295, %s1569_s18   ;;  %s1658_s20 = sadd.s32 1, %s1569_s18   ;;  %s1569_s18 = sphi %s1642_s18, %s2221_s18   ;;  %s1565_s17 = sphi %s1640_s17, %s2220_s17   ;;  %s1561_s16 = sphi %s1638_s16, %s2219_s16   ;;  %s1557_s15 = sphi %s1636_s15, %s2218_s15  }
   0x4   : > { %s83_s21 = ssub.s32 %s1569_s18, %s1658_s20  ;;  %s86_s22 = sadd.s32 1, %s1565_s17 }
   0x5   : > { %p84_p0 = scmp.eq.s32.totalorder %s83_s21, 0  ;;  %p93_p1 = scmp.ne.s32.totalorder %s1565_s17, %s1561_s16 }
   0x6   : > { %p94_p2 = scmp.eq.s32.totalorder %s1569_s18, 0  ;;  %p99_p3 = scmp.ne.s32.totalorder %s1561_s16, %s1557_s15 }
   0x7   : > { %s1668_s23 = scalar_select %p84_p0, %s1565_s17, %s86_s22  }
   0x8   : > { %p1670_p4 = por %p94_p2, %p93_p1  ;;  %p2197_p5 = scmp.eq.s32.totalorder %s1655_s19, 0 }
   0x9   : > { %p123_p6 = scmp.eq.s32.totalorder %s1655_s19, 1  ;;  %p1123_p7 = scmp.ge.s32.totalorder %s1569_s18, 1 }
   0xa   : > { %s2200_s24 = scalar_select %p1670_p4, 1, 0 }
   0xb   : > { %p1679_p8 = por %p2197_p5, %p99_p3  ;;  %p136_p9 = scmp.lt.s32.totalorder %s1569_s18, 3 }
   0xc   : > { %p1684_p10 = por %p123_p6, %p93_p1  ;;  %s1603_s28 = smov [#allocation2]  }
   0xd   : > { %s2201_s25 = scalar_select %p1679_p8, 1, 0 }
   0xe   : > { %s2202_s26 = scalar_select %p1684_p10, 1, 0 }
   0xf   : > { %p1688_p11 = pnand %p1123_p7, %p136_p9  ;;  %s149_s29 = sshll.u32 %s1603_s28, 4  ;;  %s150_s29 = int_to_ptr.vmem [resolvable:$true] %s149_s29 }
  0x10   : > { %s1604_s30 = smov [#allocation4]   ;;  %s1428_s7 = scalar_lea.vmem %s150_s29, 16 }
  0x11   : > { %s2203_s27 = scalar_select %p1688_p11, 1, 0 }
  0x12   : > { %p1239_p12 = pneg %p1688_p11  ;;  %s162_s5 = sshll.u32 %s1604_s30, 4  ;;  %s163_s5 = int_to_ptr.vmem [resolvable:$true] %s162_s5 }
  0x13   : > { %p1429_p1 = scmp.ne.s32.totalorder %s150_s29, %s1428_s7  ;;  %s1435_s8 = scalar_lea.vmem %s150_s29, 32 }
  0x14   : > { %p1696_p13 = pnand %p1239_p12, %p2197_p5  ;;  %p1436_p6 = scmp.lt.s32.totalorder %s150_s29, %s150_s29 }
  0x15   : > { %p1437_p7 = scmp.lt.s32.totalorder %s1435_s8, %s1428_s7 }
  0x16   : > { %p1419_p0 = pneg %p1696_p13 }
  0x17   : > { %p1438_p9 = por %p1437_p7, %p1436_p6 }
  0x18   : > { %p1431_p2 = pnand %p1429_p1, %p1419_p0 }
  0x1a   : > { %p1432_p3 = pneg %p1431_p2 }
  0x1c   : > { %p1439_p10 = pnand %p1438_p9, %p1432_p3 }
  0x1e   : > { %1442 = shalt.err (!%p1439_p10)
}
  0x1f   : > { %1242 = dma.hbm_to_vmem [thread:$0]  (!%p1696_p13), %s2192_s0, 16, %s150_s29, [#allocation3]  }
  0x20   : > { %s1454_s11 = scalar_lea.vmem %s163_s5, 4096  ;;  %p1462_p2 = scmp.lt.s32.totalorder %s163_s5, %s163_s5 }
  0x21   : > { %p1455_p12 = scmp.ne.s32.totalorder %s163_s5, %s1454_s11  ;;  %p1463_p8 = scmp.lt.s32.totalorder %s1454_s11, %s1454_s11 }
  0x23   : > { %p1457_p5 = pnand %p1455_p12, %p1419_p0  ;;  %p1464_p11 = por %p1463_p8, %p1462_p2 }
  0x25   : > { %p1458_p1 = pneg %p1457_p5 }
  0x27   : > { %p1465_p4 = pnand %p1464_p11, %p1458_p1 }
  0x29   : > { %1468 = shalt.err (!%p1465_p4)
}
  0x2a   : > { %s1605_s12 = smov 128   ;;  %s1606_s13 = smov 8  }
  0x2b   : > { %1245 = dma.hbm_to_vmem [thread:$0]  (!%p1696_p13), %s2194_s2, 4096, %s163_s5, [#allocation5], %s1605_s12, %s1605_s12, %s1606_s13  }
  0x2c   : > { %p1126_p10 = scmp.ge.s32.totalorder %s1569_s18, 2 }
  0x2d   : > { %p2205_p3 = scmp.ne.s32.totalorder (!%p1126_p10), %s2200_s24, 0 }
  0x2e   : > { %172 = sbr.rel (%p1126_p10) target bundleno = 83 (0x53), region = 28 }
  0x33   : > { %175 = sbr.rel (!%p2205_p3) target bundleno = 83 (0x53), region = 32  ;;  %s176_s21 = sand.u32 (%p2205_p3), 1, %s1569_s18  }
  0x34   : > { %s178_s22 = sand.u32 (%p2205_p3), 1, %s1565_s17   ;;  %s1128_s29 = sshll.u32 (%p2205_p3), %s1569_s18, 5 }
  0x35   : > { %s1127_s28 = sshll.u32 (%p2205_p3), %s178_s22, 9  ;;  %s182_s30 = ssub.s32 (%p2205_p3), 63, %s1128_s29 }
  0x36   : > { %p183_p4 = scmp.lt.s32.totalorder (%p2205_p3), %s182_s30, 32  ;;  %s1727_s7 = scalar_lea.sflag (%p2205_p3), [#allocation3], %s176_s21 }
  0x37   : > { %s180_s8 = scalar_lea.vmem (%p2205_p3), [#allocation6], %s1127_s28 }
  0x38   : > { %s2223_s30 = smov (!%p183_p4, %s182_s30), 32 }
  0x39   : > { %s1724_s6 = sshll.u32 %s2223_s30, 8 }
  0x3a   : > { %s188_s5 = ssub.s32 8192, %s1724_s6 }
  0x3b   : > { %189 = vsyncadd %s1727_s7, %s188_s5  ;;  %p1131_p5 = scmp.ne.s32.totalorder %s1724_s6, 0  ;;  %s1162_s24 = sshll.u32 %s1569_s18, 13 }
  0x3c   : > { %s1735_s11 = scalar_lea.hbm %s2195_s3, %s1162_s24  ;;  %s195_s12 = sshll.u32 %s180_s8, 4  ;;  %s1737_s12 = int_to_ptr.vmem [resolvable:$true] %s195_s12 }
  0x3d   : > { %s1469_s13 = scalar_lea.hbm %s1735_s11, %s1724_s6  ;;  %s1473_s18 = scalar_lea.hbm %s2195_s3, 16128 }
  0x3e   : > { %p1470_p8 = scmp.ne.s32.totalorder %s1735_s11, %s1469_s13  ;;  %p1474_p0 = scmp.lt.s32.totalorder %s1735_s11, %s2195_s3 }
  0x3f   : > { %p1475_p6 = scmp.lt.s32.totalorder %s1473_s18, %s1469_s13 }
  0x40   : > { %p1471_p11 = pnand %p1470_p8, %p1131_p5 }
  0x41   : > { %p1476_p7 = por %p1475_p6, %p1474_p0 }
  0x42   : > { %p1472_p13 = pneg %p1471_p11 }
  0x44   : > { %p1477_p9 = pnand %p1476_p7, %p1472_p13 }
  0x46   : > { %1480 = shalt.err (!%p1477_p9)
}
  0x47   : > { %s1481_s28 = scalar_lea.vmem %s1737_s12, %s1724_s6  ;;  %s1607_s29 = smov [#allocation6]  }
  0x48   : > { %p1482_p12 = scmp.ne.s32.totalorder %s1737_s12, %s1481_s28  ;;  %s1485_s30 = sshll.u32 %s1607_s29, 4  ;;  %s1486_s30 = int_to_ptr.vmem [resolvable:$false] %s1485_s30 }
  0x49   : > { %s1487_s5 = scalar_lea.vmem %s1486_s30, 16384  ;;  %p1488_p10 = scmp.lt.s32.totalorder %s1737_s12, %s1486_s30 }
  0x4a   : > { %p1483_p1 = pnand %p1482_p12, %p1131_p5  ;;  %p1489_p3 = scmp.lt.s32.totalorder %s1487_s5, %s1481_s28 }
  0x4c   : > { %p1484_p2 = pneg %p1483_p1  ;;  %p1490_p4 = por %p1489_p3, %p1488_p10 }
  0x4e   : > { %p1491_p8 = pnand %p1490_p4, %p1484_p2 }
  0x50   : > { %1494 = shalt.err (!%p1491_p8)
}
  0x51   : > { %s1608_s8 = smov 256   ;;  %s1609_s24 = smov 16  }
  0x52   : > { %201 = dma.hbm_to_vmem [thread:$0]  (%p1131_p5), %s1735_s11, %s1724_s6, %s1737_s12, %s1727_s7, %s1608_s8, %s1608_s8, %s1609_s24  }
  0x53 PF: > { %p2206_p11 = scmp.ne.s32.totalorder %s2203_s27, 0 }
  0x54   : > { %p2207_p13 = scmp.eq.s32.totalorder (!%p2206_p11), %s1655_s19, 0 }
  0x55   : > { %207 = sbr.rel (%p2206_p11) target bundleno = 628 (0x274), region = 36 }
  0x5a   : > { %1544 = dma.done.wait (%p2207_p13), [#allocation3], 16   ;;  %p2208_p0 = pmov %p2207_p13 }
  0x5c   : > { %1546 = vsyncadd (%p2208_p0), [#allocation3], 4294967280  ;;  %p2209_p6 = pmov %p2208_p0 }
  0x5d   : > { %p2210_p7 = pmov %p2208_p0 }
  0x5e   : > { %1548 = dma.done.wait (%p2209_p6), [#allocation5], 4096  }
  0x5f   : > { %1550 = vsyncadd (%p2210_p7), [#allocation5], 4294963200  ;;  %s217_s6 = sand.u32 1, %s1655_s19   ;;  %s219_s7 = sand.u32 1, %s1561_s16  }
  0x60   : > { %s1139_s27 = sshll.u32 %s219_s7, 9  ;;  %s218_s9 = scalar_lea.sflag [#allocation3], %s217_s6 }
  0x61   : > { %s1777_s10 = scalar_lea.vmem [#allocation6], %s1139_s27  ;;  %p2211_p5 = scmp.ne.s32.totalorder %s2201_s25, 0 }
  0x63   : > { %1552 = dma.done.wait (%p2211_p5), %s218_s9, 8192  }
  0x64   : > { %1554 = vsyncadd (%p2211_p5), %s218_s9, 4294959104  ;;  %v1610_v0 = vmov 0.0   ;;  %v335_v1 = vld [vmem:[#allocation4 + $0x78] sm:$0xff]  ;;  %v334_v2 = vld [vmem:[#allocation4 + $0x70] sm:$0xff]  ;;  %s1140_s12 = sshll.u32 %s219_s7, 8  ;;  %vm719_vm0 = vcmask 7168  }
  0x65   : > { %359 = vmatprep.subr.mxu0 %v1610_v0  ;;  %1166 = vmatprep.subr.mxu1 %v1610_v0  ;;  %v333_v3 = vld [vmem:[#allocation4 + $0x68] sm:$0xff]  ;;  %v332_v4 = vld [vmem:[#allocation4 + $0x60] sm:$0xff]  ;;  %v331_v5 = vld [vmem:[#allocation4 + $0x58] sm:$0xff]  ;;  %s1984_s13 = scalar_lea.vmem [#allocation7], %s1140_s12   ;;  %p2212_p9 = scmp.ne.s32.totalorder %s2202_s26, 0 }
  0x66   : > { %360 = vmatpush1.msra.mxu0 %v335_v1  ;;  %1198 = vmatpush1.msra.mxu1 %v335_v1  ;;  %v330_v6 = vld [vmem:[#allocation4 + $0x50] sm:$0xff]  ;;  %v329_v7 = vld [vmem:[#allocation4 + $0x48] sm:$0xff]  ;;  %v328_v8 = vld [vmem:[#allocation4 + $0x40] sm:$0xff]  ;;  %s1144_s14 = sshll.u32 (%p2212_p9), %s1655_s19, 5  ;;  %s1163_s15 = sshll.u32 (%p2212_p9), %s1655_s19, 8 }
  0x67   : > { %361 = vmatprep.subr.mxu0 %v1610_v0  ;;  %1167 = vmatprep.subr.mxu1 %v1610_v0  ;;  %v327_v9 = vld [vmem:[#allocation4 + $0x38] sm:$0xff]  ;;  %v326_v10 = vld [vmem:[#allocation4 + $0x30] sm:$0xff]  ;;  %v325_v11 = vld [vmem:[#allocation4 + $0x28] sm:$0xff]  ;;  %s760_s18 = ssub.s32 (%p2212_p9), 63, %s1144_s14  ;;  %s2057_s28 = scalar_lea.vmem (%p2212_p9), %s2196_s4, %s1163_s15  }
  0x68   : > { %362 = vmatpush1.msra.mxu0 %v334_v2  ;;  %1199 = vmatpush1.msra.mxu1 %v334_v2  ;;  %v324_v12 = vld [vmem:[#allocation4 + $0x20] sm:$0xff]  ;;  %v323_v13 = vld [vmem:[#allocation4 + $0x18] sm:$0xff]  ;;  %v322_v14 = vld [vmem:[#allocation4 + $0x10] sm:$0xff]  ;;  %p761_p12 = scmp.lt.s32.totalorder (%p2212_p9), %s760_s18, 32 }
  0x69   : > { %363 = vmatprep.subr.mxu0 %v1610_v0  ;;  %1168 = vmatprep.subr.mxu1 %v1610_v0  ;;  %v321_v15 = vld [vmem:[#allocation4 + $0x8] sm:$0xff]  ;;  %v320_v16 = vld [vmem:[#allocation4] sm:$0xff]  ;;  %v351_v17 = vld [vmem:[#allocation4 + $0xf8] sm:$0xff] }
  0x6a   : > { %364 = vmatpush1.msra.mxu0 %v333_v3  ;;  %1200 = vmatpush1.msra.mxu1 %v333_v3  ;;  %v350_v18 = vld [vmem:[#allocation4 + $0xf0] sm:$0xff]  ;;  %v349_v19 = vld [vmem:[#allocation4 + $0xe8] sm:$0xff]  ;;  %v348_v20 = vld [vmem:[#allocation4 + $0xe0] sm:$0xff] }
  0x6b   : > { %365 = vmatprep.subr.mxu0 %v1610_v0  ;;  %1169 = vmatprep.subr.mxu1 %v1610_v0  ;;  %v347_v21 = vld [vmem:[#allocation4 + $0xd8] sm:$0xff]  ;;  %v346_v22 = vld [vmem:[#allocation4 + $0xd0] sm:$0xff]  ;;  %v345_v23 = vld [vmem:[#allocation4 + $0xc8] sm:$0xff] }
  0x6c   : > { %366 = vmatpush1.msra.mxu0 %v332_v4  ;;  %1201 = vmatpush1.msra.mxu1 %v332_v4  ;;  %v344_v24 = vld [vmem:[#allocation4 + $0xc0] sm:$0xff]  ;;  %v343_v25 = vld [vmem:[#allocation4 + $0xb8] sm:$0xff]  ;;  %v342_v26 = vld [vmem:[#allocation4 + $0xb0] sm:$0xff] }
  0x6d   : > { %367 = vmatprep.subr.mxu0 %v1610_v0  ;;  %1170 = vmatprep.subr.mxu1 %v1610_v0  ;;  %v341_v27 = vld [vmem:[#allocation4 + $0xa8] sm:$0xff]  ;;  %v340_v28 = vld [vmem:[#allocation4 + $0xa0] sm:$0xff]  ;;  %v339_v29 = vld [vmem:[#allocation4 + $0x98] sm:$0xff] }
  0x6e   : > { %368 = vmatpush1.msra.mxu0 %v331_v5  ;;  %1202 = vmatpush1.msra.mxu1 %v331_v5  ;;  %v338_v30 = vld [vmem:[#allocation4 + $0x90] sm:$0xff]  ;;  %v337_v31 = vld [vmem:[#allocation4 + $0x88] sm:$0xff]  ;;  %v336_v32 = vld [vmem:[#allocation4 + $0x80] sm:$0xff] }
  0x6f   : > { %369 = vmatprep.subr.mxu0 %v1610_v0  ;;  %1171 = vmatprep.subr.mxu1 %v1610_v0  ;;  %v257_v33 = vld [vmem:[%s1777_s10 + $0x8] sm:$0xff]  ;;  %v256_v35 = vld [vmem:[%s1777_s10] sm:$0xff]  ;;  %v259_v37 = vld [vmem:[%s1777_s10 + $0x18] sm:$0xff] }
  0x70   : > { %370 = vmatpush1.msra.mxu0 %v330_v6  ;;  %1203 = vmatpush1.msra.mxu1 %v330_v6  ;;  %v289_v34 = vld [vmem:[%s1777_s10 + $0x108] sm:$0xff]  ;;  %v288_v36 = vld [vmem:[%s1777_s10 + $0x100] sm:$0xff]  ;;  %v291_v38 = vld [vmem:[%s1777_s10 + $0x118] sm:$0xff] }
  0x71   : > { %371 = vmatprep.subr.mxu0 %v1610_v0  ;;  %1172 = vmatprep.subr.mxu1 %v1610_v0  ;;  %v258_v39 = vld [vmem:[%s1777_s10 + $0x10] sm:$0xff]  ;;  %v261_v41 = vld [vmem:[%s1777_s10 + $0x28] sm:$0xff]  ;;  %v260_v43 = vld [vmem:[%s1777_s10 + $0x20] sm:$0xff] }
  0x72   : > { %372 = vmatpush1.msra.mxu0 %v329_v7  ;;  %1204 = vmatpush1.msra.mxu1 %v329_v7  ;;  %v290_v40 = vld [vmem:[%s1777_s10 + $0x110] sm:$0xff]  ;;  %v293_v42 = vld [vmem:[%s1777_s10 + $0x128] sm:$0xff]  ;;  %v292_v44 = vld [vmem:[%s1777_s10 + $0x120] sm:$0xff] }
  0x73   : > { %373 = vmatprep.subr.mxu0 %v1610_v0  ;;  %1173 = vmatprep.subr.mxu1 %v1610_v0  ;;  %v263_v45 = vld [vmem:[%s1777_s10 + $0x38] sm:$0xff]  ;;  %v262_v47 = vld [vmem:[%s1777_s10 + $0x30] sm:$0xff]  ;;  %v265_v49 = vld [vmem:[%s1777_s10 + $0x48] sm:$0xff] }
  0x74   : > { %374 = vmatpush1.msra.mxu0 %v328_v8  ;;  %1205 = vmatpush1.msra.mxu1 %v328_v8  ;;  %v295_v46 = vld [vmem:[%s1777_s10 + $0x138] sm:$0xff]  ;;  %v294_v48 = vld [vmem:[%s1777_s10 + $0x130] sm:$0xff]  ;;  %v297_v50 = vld [vmem:[%s1777_s10 + $0x148] sm:$0xff] }
  0x75   : > { %375 = vmatprep.subr.mxu0 %v1610_v0  ;;  %1174 = vmatprep.subr.mxu1 %v1610_v0  ;;  %v264_v51 = vld [vmem:[%s1777_s10 + $0x40] sm:$0xff]  ;;  %v267_v53 = vld [vmem:[%s1777_s10 + $0x58] sm:$0xff]  ;;  %v266_v55 = vld [vmem:[%s1777_s10 + $0x50] sm:$0xff] }
  0x76   : > { %376 = vmatpush1.msra.mxu0 %v327_v9  ;;  %1206 = vmatpush1.msra.mxu1 %v327_v9  ;;  %v296_v52 = vld [vmem:[%s1777_s10 + $0x140] sm:$0xff]  ;;  %v299_v54 = vld [vmem:[%s1777_s10 + $0x158] sm:$0xff]  ;;  %v298_v56 = vld [vmem:[%s1777_s10 + $0x150] sm:$0xff] }
  0x77   : > { %377 = vmatprep.subr.mxu0 %v1610_v0  ;;  %1175 = vmatprep.subr.mxu1 %v1610_v0  ;;  %v269_v57 = vld [vmem:[%s1777_s10 + $0x68] sm:$0xff]  ;;  %v268_v59 = vld [vmem:[%s1777_s10 + $0x60] sm:$0xff]  ;;  %v271_v61 = vld [vmem:[%s1777_s10 + $0x78] sm:$0xff] }
  0x78   : > { %378 = vmatpush1.msra.mxu0 %v326_v10  ;;  %1207 = vmatpush1.msra.mxu1 %v326_v10  ;;  %v301_v58 = vld [vmem:[%s1777_s10 + $0x168] sm:$0xff]  ;;  %v300_v60 = vld [vmem:[%s1777_s10 + $0x160] sm:$0xff]  ;;  %v303_v62 = vld [vmem:[%s1777_s10 + $0x178] sm:$0xff] }
  0x79   : > { %379 = vmatprep.subr.mxu0 %v1610_v0  ;;  %1176 = vmatprep.subr.mxu1 %v1610_v0  ;;  %v270_v63 = vld [vmem:[%s1777_s10 + $0x70] sm:$0xff]  ;;  %v273_v1 = vld [vmem:[%s1777_s10 + $0x88] sm:$0xff]  ;;  %v272_v3 = vld [vmem:[%s1777_s10 + $0x80] sm:$0xff] }
  0x7a   : > { %380 = vmatpush1.msra.mxu0 %v325_v11  ;;  %1208 = vmatpush1.msra.mxu1 %v325_v11  ;;  %v305_v2 = vld [vmem:[%s1777_s10 + $0x188] sm:$0xff]  ;;  %v304_v4 = vld [vmem:[%s1777_s10 + $0x180] sm:$0xff]  ;;  %v275_v5 = vld [vmem:[%s1777_s10 + $0x98] sm:$0xff] }
  0x7b   : > { %381 = vmatprep.subr.mxu0 %v1610_v0  ;;  %1177 = vmatprep.subr.mxu1 %v1610_v0  ;;  %v307_v6 = vld [vmem:[%s1777_s10 + $0x198] sm:$0xff]  ;;  %v274_v7 = vld [vmem:[%s1777_s10 + $0x90] sm:$0xff]  ;;  %v277_v9 = vld [vmem:[%s1777_s10 + $0xa8] sm:$0xff] }
  0x7c   : > { %382 = vmatpush1.msra.mxu0 %v324_v12  ;;  %1209 = vmatpush1.msra.mxu1 %v324_v12  ;;  %v306_v8 = vld [vmem:[%s1777_s10 + $0x190] sm:$0xff]  ;;  %v309_v10 = vld [vmem:[%s1777_s10 + $0x1a8] sm:$0xff]  ;;  %v276_v11 = vld [vmem:[%s1777_s10 + $0xa0] sm:$0xff] }
  0x7d   : > { %383 = vmatprep.subr.mxu0 %v1610_v0  ;;  %1178 = vmatprep.subr.mxu1 %v1610_v0  ;;  %v308_v12 = vld [vmem:[%s1777_s10 + $0x1a0] sm:$0xff] }
  0x7e   : > { %384 = vmatpush1.msra.mxu0 %v323_v13  ;;  %1210 = vmatpush1.msra.mxu1 %v323_v13  ;;  %v279_v13 = vld [vmem:[%s1777_s10 + $0xb8] sm:$0xff] }
  0x7f   : > { %385 = vmatprep.subr.mxu0 %v1610_v0  ;;  %1179 = vmatprep.subr.mxu1 %v1610_v0 }
  0x80   : > { %386 = vmatpush1.msra.mxu0 %v322_v14  ;;  %1211 = vmatpush1.msra.mxu1 %v322_v14  ;;  %v311_v14 = vld [vmem:[%s1777_s10 + $0x1b8] sm:$0xff] }
  0x81   : > { %387 = vmatprep.subr.mxu0 %v1610_v0  ;;  %1180 = vmatprep.subr.mxu1 %v1610_v0 }
  0x82   : > { %388 = vmatpush1.msra.mxu0 %v321_v15  ;;  %1212 = vmatpush1.msra.mxu1 %v321_v15  ;;  %v278_v15 = vld [vmem:[%s1777_s10 + $0xb0] sm:$0xff] }
  0x83   : > { %389 = vmatprep.subr.mxu0 %v1610_v0  ;;  %1181 = vmatprep.subr.mxu1 %v1610_v0 }
  0x84   : > { %390 = vmatpush1.msra.mxu0 %v320_v16  ;;  %1213 = vmatpush1.msra.mxu1 %v320_v16  ;;  %v310_v16 = vld [vmem:[%s1777_s10 + $0x1b0] sm:$0xff] }
  0x85   : > { %391 = vmatprep.subr.mxu0 %v1610_v0  ;;  %1182 = vmatprep.subr.mxu1 %v1610_v0 }
  0x86   : > { %392 = vmatpush2.msra.mxu0 %v351_v17  ;;  %1214 = vmatpush2.msra.mxu1 %v351_v17  ;;  %v281_v17 = vld [vmem:[%s1777_s10 + $0xc8] sm:$0xff] }
  0x87   : > { %393 = vmatprep.subr.mxu0 %v1610_v0  ;;  %1183 = vmatprep.subr.mxu1 %v1610_v0 }
  0x88   : > { %394 = vmatpush2.msra.mxu0 %v350_v18  ;;  %1215 = vmatpush2.msra.mxu1 %v350_v18  ;;  %v313_v18 = vld [vmem:[%s1777_s10 + $0x1c8] sm:$0xff] }
  0x89   : > { %395 = vmatprep.subr.mxu0 %v1610_v0  ;;  %1184 = vmatprep.subr.mxu1 %v1610_v0 }
  0x8a   : > { %396 = vmatpush2.msra.mxu0 %v349_v19  ;;  %1216 = vmatpush2.msra.mxu1 %v349_v19  ;;  %v280_v19 = vld [vmem:[%s1777_s10 + $0xc0] sm:$0xff] }
  0x8b   : > { %397 = vmatprep.subr.mxu0 %v1610_v0  ;;  %1185 = vmatprep.subr.mxu1 %v1610_v0 }
  0x8c   : > { %398 = vmatpush2.msra.mxu0 %v348_v20  ;;  %1217 = vmatpush2.msra.mxu1 %v348_v20  ;;  %v312_v20 = vld [vmem:[%s1777_s10 + $0x1c0] sm:$0xff] }
  0x8d   : > { %399 = vmatprep.subr.mxu0 %v1610_v0  ;;  %1186 = vmatprep.subr.mxu1 %v1610_v0 }
  0x8e   : > { %400 = vmatpush2.msra.mxu0 %v347_v21  ;;  %1218 = vmatpush2.msra.mxu1 %v347_v21  ;;  %v283_v21 = vld [vmem:[%s1777_s10 + $0xd8] sm:$0xff] }
  0x8f   : > { %401 = vmatprep.subr.mxu0 %v1610_v0  ;;  %1187 = vmatprep.subr.mxu1 %v1610_v0 }
  0x90   : > { %402 = vmatpush2.msra.mxu0 %v346_v22  ;;  %1219 = vmatpush2.msra.mxu1 %v346_v22  ;;  %v315_v22 = vld [vmem:[%s1777_s10 + $0x1d8] sm:$0xff] }
  0x91   : > { %403 = vmatprep.subr.mxu0 %v1610_v0  ;;  %1188 = vmatprep.subr.mxu1 %v1610_v0 }
  0x92   : > { %404 = vmatpush2.msra.mxu0 %v345_v23  ;;  %1220 = vmatpush2.msra.mxu1 %v345_v23  ;;  %v282_v23 = vld [vmem:[%s1777_s10 + $0xd0] sm:$0xff] }
  0x93   : > { %405 = vmatprep.subr.mxu0 %v1610_v0  ;;  %1189 = vmatprep.subr.mxu1 %v1610_v0 }
  0x94   : > { %406 = vmatpush2.msra.mxu0 %v344_v24  ;;  %1221 = vmatpush2.msra.mxu1 %v344_v24  ;;  %v314_v24 = vld [vmem:[%s1777_s10 + $0x1d0] sm:$0xff] }
  0x95   : > { %407 = vmatprep.subr.mxu0 %v1610_v0  ;;  %1190 = vmatprep.subr.mxu1 %v1610_v0 }
  0x96   : > { %408 = vmatpush2.msra.mxu0 %v343_v25  ;;  %1222 = vmatpush2.msra.mxu1 %v343_v25  ;;  %v285_v25 = vld [vmem:[%s1777_s10 + $0xe8] sm:$0xff] }
  0x97   : > { %409 = vmatprep.subr.mxu0 %v1610_v0  ;;  %1191 = vmatprep.subr.mxu1 %v1610_v0 }
  0x98   : > { %410 = vmatpush2.msra.mxu0 %v342_v26  ;;  %1223 = vmatpush2.msra.mxu1 %v342_v26  ;;  %v317_v26 = vld [vmem:[%s1777_s10 + $0x1e8] sm:$0xff] }
  0x99   : > { %411 = vmatprep.subr.mxu0 %v1610_v0  ;;  %1192 = vmatprep.subr.mxu1 %v1610_v0 }
  0x9a   : > { %412 = vmatpush2.msra.mxu0 %v341_v27  ;;  %1224 = vmatpush2.msra.mxu1 %v341_v27  ;;  %v284_v27 = vld [vmem:[%s1777_s10 + $0xe0] sm:$0xff] }
  0x9b   : > { %413 = vmatprep.subr.mxu0 %v1610_v0  ;;  %1193 = vmatprep.subr.mxu1 %v1610_v0 }
  0x9c   : > { %414 = vmatpush2.msra.mxu0 %v340_v28  ;;  %1225 = vmatpush2.msra.mxu1 %v340_v28  ;;  %v316_v28 = vld [vmem:[%s1777_s10 + $0x1e0] sm:$0xff] }
  0x9d   : > { %415 = vmatprep.subr.mxu0 %v1610_v0  ;;  %1194 = vmatprep.subr.mxu1 %v1610_v0 }
  0x9e   : > { %416 = vmatpush2.msra.mxu0 %v339_v29  ;;  %1226 = vmatpush2.msra.mxu1 %v339_v29  ;;  %v287_v29 = vld [vmem:[%s1777_s10 + $0xf8] sm:$0xff] }
  0x9f   : > { %417 = vmatprep.subr.mxu0 %v1610_v0  ;;  %1195 = vmatprep.subr.mxu1 %v1610_v0 }
  0xa0   : > { %418 = vmatpush2.msra.mxu0 %v338_v30  ;;  %1227 = vmatpush2.msra.mxu1 %v338_v30  ;;  %v319_v30 = vld [vmem:[%s1777_s10 + $0x1f8] sm:$0xff] }
  0xa1   : > { %419 = vmatprep.subr.mxu0 %v1610_v0  ;;  %1196 = vmatprep.subr.mxu1 %v1610_v0 }
  0xa2   : > { %420 = vmatpush2.msra.mxu0 %v337_v31  ;;  %1228 = vmatpush2.msra.mxu1 %v337_v31  ;;  %v286_v31 = vld [vmem:[%s1777_s10 + $0xf0] sm:$0xff] }
  0xa3   : > { %421 = vmatprep.subr.mxu0 %v1610_v0  ;;  %1197 = vmatprep.subr.mxu1 %v1610_v0  ;;  %v302_v0 = vld [vmem:[%s1777_s10 + $0x170] sm:$0xff] }
  0xa4   : > { %422 = vmatpush2.msra.mxu0 %v336_v32  ;;  %1229 = vmatpush2.msra.mxu1 %v336_v32  ;;  %v318_v32 = vld [vmem:[%s1777_s10 + $0x1f0] sm:$0xff] }
  0xa5   : > { %423 = vmatprep.mubr.f32.mxu0 %v257_v33  ;;  %503 = vmatprep.mubr.f32.mxu1 %v289_v34  ;;  %v1911_v33 = vld [vmem:[#allocation2] ss:$0 sm:$0xff] }
  0xa6   : > { %424 = vmatmul.mubr.f32.vlgmr.msra.gmra.mxu0 %v256_v35  ;;  %504 = vmatmul.mubr.f32.vlgmr.msra.gmra.mxu1 %v288_v36 }
  0xa7   : > { %428 = vmatprep.mubr.f32.mxu0 %v259_v37  ;;  %508 = vmatprep.mubr.f32.mxu1 %v291_v38 }
  0xaa   : > { %429 = vmatmul.mubr.f32.gmra.mxu0 %v258_v39  ;;  %509 = vmatmul.mubr.f32.gmra.mxu1 %v290_v40 }
  0xab   : > { %433 = vmatprep.mubr.f32.mxu0 %v261_v41  ;;  %513 = vmatprep.mubr.f32.mxu1 %v293_v42 }
  0xae   : > { %434 = vmatmul.mubr.f32.gmra.mxu0 %v260_v43  ;;  %514 = vmatmul.mubr.f32.gmra.mxu1 %v292_v44 }
  0xaf   : > { %438 = vmatprep.mubr.f32.mxu0 %v263_v45  ;;  %518 = vmatprep.mubr.f32.mxu1 %v295_v46 }
  0xb2   : > { %439 = vmatmul.mubr.f32.gmra.mxu0 %v262_v47  ;;  %519 = vmatmul.mubr.f32.gmra.mxu1 %v294_v48 }
  0xb3   : > { %443 = vmatprep.mubr.f32.mxu0 %v265_v49  ;;  %523 = vmatprep.mubr.f32.mxu1 %v297_v50 }
  0xb6   : > { %444 = vmatmul.mubr.f32.gmra.mxu0 %v264_v51  ;;  %524 = vmatmul.mubr.f32.gmra.mxu1 %v296_v52 }
  0xb7   : > { %448 = vmatprep.mubr.f32.mxu0 %v267_v53  ;;  %528 = vmatprep.mubr.f32.mxu1 %v299_v54 }
  0xba   : > { %449 = vmatmul.mubr.f32.gmra.mxu0 %v266_v55  ;;  %529 = vmatmul.mubr.f32.gmra.mxu1 %v298_v56 }
  0xbb   : > { %453 = vmatprep.mubr.f32.mxu0 %v269_v57  ;;  %533 = vmatprep.mubr.f32.mxu1 %v301_v58  ;;  %v1924_v58 = vld [vmem:[%s2193_s1] ss:$0 sm:$0xff] }
  0xbe   : > { %454 = vmatmul.mubr.f32.gmra.mxu0 %v268_v59  ;;  %534 = vmatmul.mubr.f32.gmra.mxu1 %v300_v60 }
  0xbf   : > { %458 = vmatprep.mubr.f32.mxu0 %v271_v61  ;;  %538 = vmatprep.mubr.f32.mxu1 %v303_v62 }
  0xc2   : > { %459 = vmatmul.mubr.f32.gmra.mxu0 %v270_v63  ;;  %539 = vmatmul.mubr.f32.gmra.mxu1 %v302_v0 }
  0xc3   : > { %463 = vmatprep.mubr.f32.mxu0 %v273_v1  ;;  %543 = vmatprep.mubr.f32.mxu1 %v305_v2 }
  0xc6   : > { %464 = vmatmul.mubr.f32.gmra.mxu0 %v272_v3  ;;  %544 = vmatmul.mubr.f32.gmra.mxu1 %v304_v4 }
  0xc7   : > { %468 = vmatprep.mubr.f32.mxu0 %v275_v5  ;;  %548 = vmatprep.mubr.f32.mxu1 %v307_v6 }
  0xca   : > { %469 = vmatmul.mubr.f32.gmra.mxu0 %v274_v7  ;;  %549 = vmatmul.mubr.f32.gmra.mxu1 %v306_v8 }
  0xcb   : > { %473 = vmatprep.mubr.f32.mxu0 %v277_v9  ;;  %553 = vmatprep.mubr.f32.mxu1 %v309_v10 }
  0xce   : > { %474 = vmatmul.mubr.f32.gmra.mxu0 %v276_v11  ;;  %554 = vmatmul.mubr.f32.gmra.mxu1 %v308_v12 }
  0xcf   : > { %478 = vmatprep.mubr.f32.mxu0 %v279_v13  ;;  %558 = vmatprep.mubr.f32.mxu1 %v311_v14 }
  0xd2   : > { %479 = vmatmul.mubr.f32.gmra.mxu0 %v278_v15  ;;  %559 = vmatmul.mubr.f32.gmra.mxu1 %v310_v16 }
  0xd3   : > { %483 = vmatprep.mubr.f32.mxu0 %v281_v17  ;;  %563 = vmatprep.mubr.f32.mxu1 %v313_v18 }
  0xd6   : > { %484 = vmatmul.mubr.f32.gmra.mxu0 %v280_v19  ;;  %564 = vmatmul.mubr.f32.gmra.mxu1 %v312_v20 }
  0xd7   : > { %488 = vmatprep.mubr.f32.mxu0 %v283_v21  ;;  %568 = vmatprep.mubr.f32.mxu1 %v315_v22 }
  0xda   : > { %489 = vmatmul.mubr.f32.gmra.mxu0 %v282_v23  ;;  %569 = vmatmul.mubr.f32.gmra.mxu1 %v314_v24 }
  0xdb   : > { %493 = vmatprep.mubr.f32.mxu0 %v285_v25  ;;  %573 = vmatprep.mubr.f32.mxu1 %v317_v26 }
  0xde   : > { %494 = vmatmul.mubr.f32.gmra.mxu0 %v284_v27  ;;  %574 = vmatmul.mubr.f32.gmra.mxu1 %v316_v28 }
  0xdf   : > { %498 = vmatprep.mubr.f32.mxu0 %v287_v29  ;;  %578 = vmatprep.mubr.f32.mxu1 %v319_v30 }
  0xe2   : > { %499 = vmatmul.mubr.f32.gmra.mxu0 %v286_v31  ;;  %579 = vmatmul.mubr.f32.gmra.mxu1 %v318_v32 }
 0x166   : > { %v425_v34 = vpop.f32.mrf.mxu0  ;;  %v505_v35 = vpop.f32.mrf.mxu1 }
 0x167   : > { %v426_v36 = vadd.f32 %v1911_v33, %v425_v34  ;;  %v506_v37 = vadd.f32 %v1911_v33, %v505_v35 }
 0x168   : > { %v427_v38 = vpop.f32.mrf.mxu0  ;;  %v507_v39 = vpop.f32.mrf.mxu1 }
 0x169   : > { %1353 = vtanh.f32 %v426_v36 }
 0x16a   : > { %v430_v40 = vpop.f32.mrf.mxu0  ;;  %v510_v41 = vpop.f32.mrf.mxu1  ;;  %1355 = vtanh.f32 %v506_v37 }
 0x16b   : > { %v431_v42 = vadd.f32 %v1911_v33, %v430_v40  ;;  %v511_v43 = vadd.f32 %v1911_v33, %v510_v41 }
 0x16c   : > { %v432_v44 = vpop.f32.mrf.mxu0  ;;  %v512_v45 = vpop.f32.mrf.mxu1 }
 0x16d   : > { %1357 = vtanh.f32 %v511_v43 }
 0x16e   : > { %v435_v46 = vpop.f32.mrf.mxu0  ;;  %v515_v47 = vpop.f32.mrf.mxu1  ;;  %1359 = vtanh.f32 %v431_v42 }
 0x16f   : > { %v436_v48 = vadd.f32 %v1911_v33, %v435_v46  ;;  %v516_v49 = vadd.f32 %v1911_v33, %v515_v47 }
 0x170   : > { %v437_v50 = vpop.f32.mrf.mxu0  ;;  %v517_v51 = vpop.f32.mrf.mxu1 }
 0x171   : > { %1361 = vtanh.f32 %v436_v48 }
 0x172   : > { %1363 = vtanh.f32 %v516_v49  ;;  %v440_v52 = vpop.f32.mrf.mxu0  ;;  %v520_v53 = vpop.f32.mrf.mxu1 }
 0x173   : > { %v441_v54 = vadd.f32 %v1911_v33, %v440_v52  ;;  %v521_v55 = vadd.f32 %v1911_v33, %v520_v53 }
 0x174   : > { %v442_v56 = vpop.f32.mrf.mxu0  ;;  %v522_v57 = vpop.f32.mrf.mxu1 }
 0x175   : > { %1365 = vtanh.f32 %v441_v54 }
 0x176   : > { %v1354_v59 = vpop.eup %1353  ;;  %1367 = vtanh.f32 %v521_v55  ;;  %v445_v60 = vpop.f32.mrf.mxu0 }
 0x177   : > { %v525_v61 = vpop.f32.mrf.mxu1  ;;  %v446_v62 = vadd.f32 %v1911_v33, %v445_v60  ;;  %v623_v0 = vmul.f32 %v1354_v59, %v1924_v58  ;;  %v1356_v1 = vpop.eup %1355 }
 0x178   : > { %v526_v63 = vadd.f32 %v1911_v33, %v525_v61  ;;  %v447_v2 = vpop.f32.mrf.mxu0  ;;  %v639_v9 = vmul.f32 %v1356_v1, %v1924_v58 }
 0x179   : > { %v527_v3 = vpop.f32.mrf.mxu1  ;;  %1369 = vtanh.f32 %v446_v62  ;;  %655 = vadd.xlane.f32.xlu0 %v623_v0 }
 0x17a   : > { %1371 = vtanh.f32 %v526_v63  ;;  %v450_v4 = vpop.f32.mrf.mxu0  ;;  %v1358_v6 = vpop.eup %1357 }
 0x17b   : > { %v530_v5 = vpop.f32.mrf.mxu1  ;;  %v451_v7 = vadd.f32 %v1911_v33, %v450_v4  ;;  %v1360_v10 = vpop.eup %1359  ;;  %v640_v12 = vmul.f32 %v1358_v6, %v1924_v58 }
 0x17c   : > { %v531_v8 = vadd.f32 %v1911_v33, %v530_v5  ;;  %v452_v11 = vpop.f32.mrf.mxu0  ;;  %v624_v21 = vmul.f32 %v1360_v10, %v1924_v58 }
 0x17d   : > { %v532_v13 = vpop.f32.mrf.mxu1  ;;  %1373 = vtanh.f32 %v451_v7  ;;  %687 = vadd.xlane.f32.xlu0 %v639_v9  ;;  %689 = vadd.xlane.f32.xlu1 %v640_v12 }
 0x17e   : > { %v1362_v14 = vpop.eup %1361  ;;  %1375 = vtanh.f32 %v531_v8  ;;  %v455_v15 = vpop.f32.mrf.mxu0 }
 0x17f   : > { %v535_v16 = vpop.f32.mrf.mxu1  ;;  %v1364_v17 = vpop.eup %1363  ;;  %v456_v18 = vadd.f32 %v1911_v33, %v455_v15  ;;  %v625_v20 = vmul.f32 %v1362_v14, %v1924_v58 }
 0x180   : > { %v536_v19 = vadd.f32 %v1911_v33, %v535_v16  ;;  %v457_v22 = vpop.f32.mrf.mxu0  ;;  %v641_v24 = vmul.f32 %v1364_v17, %v1924_v58 }
 0x181   : > { %v537_v23 = vpop.f32.mrf.mxu1  ;;  %1377 = vtanh.f32 %v456_v18  ;;  %657 = vadd.xlane.f32.xlu0 %v624_v21  ;;  %659 = vadd.xlane.f32.xlu1 %v625_v20 }
 0x182   : > { %v1366_v25 = vpop.eup %1365  ;;  %1379 = vtanh.f32 %v536_v19  ;;  %v460_v26 = vpop.f32.mrf.mxu0 }
 0x183   : > { %v540_v27 = vpop.f32.mrf.mxu1  ;;  %v1368_v28 = vpop.eup %1367  ;;  %v461_v29 = vadd.f32 %v1911_v33, %v460_v26  ;;  %v626_v31 = vmul.f32 %v1366_v25, %v1924_v58 }
 0x184   : > { %v541_v30 = vadd.f32 %v1911_v33, %v540_v27  ;;  %v462_v32 = vpop.f32.mrf.mxu0  ;;  %v642_v38 = vmul.f32 %v1368_v28, %v1924_v58 }
 0x185   : > { %v542_v34 = vpop.f32.mrf.mxu1  ;;  %1381 = vtanh.f32 %v461_v29  ;;  %691 = vadd.xlane.f32.xlu0 %v641_v24  ;;  %661 = vadd.xlane.f32.xlu1 %v626_v31 }
 0x186   : > { %v1370_v35 = vpop.eup %1369  ;;  %1383 = vtanh.f32 %v541_v30  ;;  %v465_v36 = vpop.f32.mrf.mxu0 }
 0x187   : > { %v545_v37 = vpop.f32.mrf.mxu1  ;;  %v1372_v39 = vpop.eup %1371  ;;  %v466_v40 = vadd.f32 %v1911_v33, %v465_v36  ;;  %v627_v42 = vmul.f32 %v1370_v35, %v1924_v58 }
 0x188   : > { %v546_v41 = vadd.f32 %v1911_v33, %v545_v37  ;;  %v467_v43 = vpop.f32.mrf.mxu0  ;;  %v643_v45 = vmul.f32 %v1372_v39, %v1924_v58 }
 0x189   : > { %v547_v44 = vpop.f32.mrf.mxu1  ;;  %1385 = vtanh.f32 %v466_v40  ;;  %663 = vadd.xlane.f32.xlu0 %v627_v42  ;;  %693 = vadd.xlane.f32.xlu1 %v642_v38 }
 0x18a   : > { %v1374_v46 = vpop.eup %1373  ;;  %1387 = vtanh.f32 %v546_v41  ;;  %v470_v47 = vpop.f32.mrf.mxu0 }
 0x18b   : > { %v550_v48 = vpop.f32.mrf.mxu1  ;;  %v1376_v49 = vpop.eup %1375  ;;  %v471_v50 = vadd.f32 %v1911_v33, %v470_v47  ;;  %v628_v52 = vmul.f32 %v1374_v46, %v1924_v58 }
 0x18c   : > { %v551_v51 = vadd.f32 %v1911_v33, %v550_v48  ;;  %v472_v53 = vpop.f32.mrf.mxu0  ;;  %v644_v59 = vmul.f32 %v1376_v49, %v1924_v58 }
 0x18d   : > { %v552_v54 = vpop.f32.mrf.mxu1  ;;  %1389 = vtanh.f32 %v471_v50  ;;  %695 = vadd.xlane.f32.xlu0 %v643_v45  ;;  %665 = vadd.xlane.f32.xlu1 %v628_v52 }
 0x18e   : > { %v1378_v55 = vpop.eup %1377  ;;  %1391 = vtanh.f32 %v551_v51  ;;  %v475_v56 = vpop.f32.mrf.mxu0 }
 0x18f   : > { %v555_v57 = vpop.f32.mrf.mxu1  ;;  %v1380_v60 = vpop.eup %1379  ;;  %v476_v61 = vadd.f32 %v1911_v33, %v475_v56  ;;  %v629_v63 = vmul.f32 %v1378_v55, %v1924_v58 }
 0x190   : > { %v556_v62 = vadd.f32 %v1911_v33, %v555_v57  ;;  %v477_v0 = vpop.f32.mrf.mxu0  ;;  %v645_v2 = vmul.f32 %v1380_v60, %v1924_v58 }
 0x191   : > { %v557_v1 = vpop.f32.mrf.mxu1  ;;  %1393 = vtanh.f32 %v476_v61  ;;  %667 = vadd.xlane.f32.xlu0 %v629_v63  ;;  %697 = vadd.xlane.f32.xlu1 %v644_v59 }
 0x192   : > { %v1382_v3 = vpop.eup %1381  ;;  %1395 = vtanh.f32 %v556_v62  ;;  %v480_v4 = vpop.f32.mrf.mxu0 }
 0x193   : > { %v560_v5 = vpop.f32.mrf.mxu1  ;;  %v1384_v6 = vpop.eup %1383  ;;  %v481_v7 = vadd.f32 %v1911_v33, %v480_v4  ;;  %v630_v9 = vmul.f32 %v1382_v3, %v1924_v58 }
 0x194   : > { %v561_v8 = vadd.f32 %v1911_v33, %v560_v5  ;;  %v482_v10 = vpop.f32.mrf.mxu0  ;;  %v646_v15 = vmul.f32 %v1384_v6, %v1924_v58 }
 0x195   : > { %v562_v11 = vpop.f32.mrf.mxu1  ;;  %1397 = vtanh.f32 %v481_v7  ;;  %699 = vadd.xlane.f32.xlu0 %v645_v2  ;;  %669 = vadd.xlane.f32.xlu1 %v630_v9 }
 0x196   : > { %v1386_v12 = vpop.eup %1385  ;;  %1399 = vtanh.f32 %v561_v8  ;;  %v485_v13 = vpop.f32.mrf.mxu0 }
 0x197   : > { %v565_v14 = vpop.f32.mrf.mxu1  ;;  %v1388_v16 = vpop.eup %1387  ;;  %v486_v17 = vadd.f32 %v1911_v33, %v485_v13  ;;  %v631_v19 = vmul.f32 %v1386_v12, %v1924_v58 }
 0x198   : > { %v566_v18 = vadd.f32 %v1911_v33, %v565_v14  ;;  %v487_v20 = vpop.f32.mrf.mxu0  ;;  %v647_v22 = vmul.f32 %v1388_v16, %v1924_v58 }
 0x199   : > { %v567_v21 = vpop.f32.mrf.mxu1  ;;  %1401 = vtanh.f32 %v486_v17  ;;  %671 = vadd.xlane.f32.xlu0 %v631_v19  ;;  %701 = vadd.xlane.f32.xlu1 %v646_v15 }
 0x19a   : > { %v1390_v23 = vpop.eup %1389  ;;  %1403 = vtanh.f32 %v566_v18  ;;  %v490_v24 = vpop.f32.mrf.mxu0 }
 0x19b   : > { %v570_v25 = vpop.f32.mrf.mxu1  ;;  %v1392_v26 = vpop.eup %1391  ;;  %v491_v27 = vadd.f32 %v1911_v33, %v490_v24  ;;  %v632_v29 = vmul.f32 %v1390_v23, %v1924_v58 }
 0x19c   : > { %v571_v28 = vadd.f32 %v1911_v33, %v570_v25  ;;  %v492_v30 = vpop.f32.mrf.mxu0  ;;  %v648_v36 = vmul.f32 %v1392_v26, %v1924_v58 }
 0x19d   : > { %v572_v31 = vpop.f32.mrf.mxu1  ;;  %1405 = vtanh.f32 %v491_v27  ;;  %703 = vadd.xlane.f32.xlu0 %v647_v22  ;;  %673 = vadd.xlane.f32.xlu1 %v632_v29 }
 0x19e   : > { %v1394_v32 = vpop.eup %1393  ;;  %1407 = vtanh.f32 %v571_v28  ;;  %v495_v34 = vpop.f32.mrf.mxu0 }
 0x19f   : > { %v575_v35 = vpop.f32.mrf.mxu1  ;;  %v1396_v37 = vpop.eup %1395  ;;  %v496_v38 = vadd.f32 %v1911_v33, %v495_v34  ;;  %v633_v40 = vmul.f32 %v1394_v32, %v1924_v58 }
 0x1a0   : > { %v576_v39 = vadd.f32 %v1911_v33, %v575_v35  ;;  %v497_v41 = vpop.f32.mrf.mxu0  ;;  %v649_v43 = vmul.f32 %v1396_v37, %v1924_v58 }
 0x1a1   : > { %v577_v42 = vpop.f32.mrf.mxu1  ;;  %1409 = vtanh.f32 %v496_v38  ;;  %675 = vadd.xlane.f32.xlu0 %v633_v40  ;;  %705 = vadd.xlane.f32.xlu1 %v648_v36 }
 0x1a2   : > { %v1398_v44 = vpop.eup %1397  ;;  %1411 = vtanh.f32 %v576_v39  ;;  %v500_v45 = vpop.f32.mrf.mxu0 }
 0x1a3   : > { %v580_v46 = vpop.f32.mrf.mxu1  ;;  %v1400_v47 = vpop.eup %1399  ;;  %v501_v48 = vadd.f32 %v1911_v33, %v500_v45  ;;  %v634_v50 = vmul.f32 %v1398_v44, %v1924_v58 }
 0x1a4   : > { %v581_v49 = vadd.f32 %v1911_v33, %v580_v46  ;;  %v502_v51 = vpop.f32.mrf.mxu0  ;;  %v650_v54 = vmul.f32 %v1400_v47, %v1924_v58 }
 0x1a5   : > { %v582_v52 = vpop.f32.mrf.mxu1  ;;  %1413 = vtanh.f32 %v501_v48  ;;  %707 = vadd.xlane.f32.xlu0 %v649_v43  ;;  %677 = vadd.xlane.f32.xlu1 %v634_v50 }
 0x1a6   : > { %v1402_v53 = vpop.eup %1401  ;;  %1415 = vtanh.f32 %v581_v49 }
 0x1a7   : > { %v1404_v55 = vpop.eup %1403  ;;  %v635_v56 = vmul.f32 %v1402_v53, %v1924_v58 }
 0x1a8   : > { %v651_v57 = vmul.f32 %v1404_v55, %v1924_v58 }
 0x1a9   : > { %679 = vadd.xlane.f32.xlu0 %v635_v56  ;;  %709 = vadd.xlane.f32.xlu1 %v650_v54 }
 0x1aa   : > { %v1406_v59 = vpop.eup %1405 }
 0x1ab   : > { %v1408_v33 = vpop.eup %1407  ;;  %v636_v60 = vmul.f32 %v1406_v59, %v1924_v58 }
 0x1ac   : > { %v652_v62 = vmul.f32 %v1408_v33, %v1924_v58 }
 0x1ad   : > { %711 = vadd.xlane.f32.xlu0 %v651_v57  ;;  %681 = vadd.xlane.f32.xlu1 %v636_v60 }
 0x1ae   : > { %v1410_v61 = vpop.eup %1409 }
 0x1af   : > { %v1412_v63 = vpop.eup %1411  ;;  %v637_v0 = vmul.f32 %v1410_v61, %v1924_v58 }
 0x1b0   : > { %v653_v1 = vmul.f32 %v1412_v63, %v1924_v58 }
 0x1b1   : > { %683 = vadd.xlane.f32.xlu0 %v637_v0  ;;  %713 = vadd.xlane.f32.xlu1 %v652_v62 }
 0x1b2   : > { %v1414_v2 = vpop.eup %1413 }
 0x1b3   : > { %v1416_v3 = vpop.eup %1415  ;;  %v638_v4 = vmul.f32 %v1414_v2, %v1924_v58 }
 0x1b4   : > { %v654_v5 = vmul.f32 %v1416_v3, %v1924_v58 }
 0x1b5   : > { %715 = vadd.xlane.f32.xlu0 %v653_v1  ;;  %685 = vadd.xlane.f32.xlu1 %v638_v4 }
 0x1b9   : > { %717 = vadd.xlane.f32.xlu1 %v654_v5 }
 0x202   : > { %v656_v6 = vpop.xlane.xlu0 %655 }
 0x203   : > { %720 = vst.msk [vmem:[%s1984_s13] sm:$0xff] %vm719_vm0, %v656_v6 }
 0x206   : > { %v688_v58 = vpop.xlane.xlu0 %687  ;;  %v690_v7 = vpop.xlane.xlu1 %689 }
 0x207   : > { %736 = vst.msk [vmem:[%s1984_s13 + $0x80] sm:$0xff] %vm719_vm0, %v688_v58  ;;  %737 = vst.msk [vmem:[%s1984_s13 + $0x88] sm:$0xff] %vm719_vm0, %v690_v7 }
 0x20a   : > { %v658_v8 = vpop.xlane.xlu0 %657  ;;  %v660_v9 = vpop.xlane.xlu1 %659 }
 0x20b   : > { %721 = vst.msk [vmem:[%s1984_s13 + $0x8] sm:$0xff] %vm719_vm0, %v658_v8  ;;  %722 = vst.msk [vmem:[%s1984_s13 + $0x10] sm:$0xff] %vm719_vm0, %v660_v9 }
 0x20e   : > { %v692_v10 = vpop.xlane.xlu0 %691  ;;  %v662_v11 = vpop.xlane.xlu1 %661 }
 0x20f   : > { %738 = vst.msk [vmem:[%s1984_s13 + $0x90] sm:$0xff] %vm719_vm0, %v692_v10  ;;  %723 = vst.msk [vmem:[%s1984_s13 + $0x18] sm:$0xff] %vm719_vm0, %v662_v11 }
 0x212   : > { %v664_v12 = vpop.xlane.xlu0 %663  ;;  %v694_v13 = vpop.xlane.xlu1 %693 }
 0x213   : > { %724 = vst.msk [vmem:[%s1984_s13 + $0x20] sm:$0xff] %vm719_vm0, %v664_v12  ;;  %739 = vst.msk [vmem:[%s1984_s13 + $0x98] sm:$0xff] %vm719_vm0, %v694_v13 }
 0x216   : > { %v696_v14 = vpop.xlane.xlu0 %695  ;;  %v666_v15 = vpop.xlane.xlu1 %665 }
 0x217   : > { %740 = vst.msk [vmem:[%s1984_s13 + $0xa0] sm:$0xff] %vm719_vm0, %v696_v14  ;;  %725 = vst.msk [vmem:[%s1984_s13 + $0x28] sm:$0xff] %vm719_vm0, %v666_v15 }
 0x21a   : > { %v668_v16 = vpop.xlane.xlu0 %667  ;;  %v698_v17 = vpop.xlane.xlu1 %697 }
 0x21b   : > { %726 = vst.msk [vmem:[%s1984_s13 + $0x30] sm:$0xff] %vm719_vm0, %v668_v16  ;;  %741 = vst.msk [vmem:[%s1984_s13 + $0xa8] sm:$0xff] %vm719_vm0, %v698_v17 }
 0x21e   : > { %v700_v18 = vpop.xlane.xlu0 %699  ;;  %v670_v19 = vpop.xlane.xlu1 %669 }
 0x21f   : > { %742 = vst.msk [vmem:[%s1984_s13 + $0xb0] sm:$0xff] %vm719_vm0, %v700_v18  ;;  %727 = vst.msk [vmem:[%s1984_s13 + $0x38] sm:$0xff] %vm719_vm0, %v670_v19 }
 0x222   : > { %v672_v20 = vpop.xlane.xlu0 %671  ;;  %v702_v21 = vpop.xlane.xlu1 %701 }
 0x223   : > { %728 = vst.msk [vmem:[%s1984_s13 + $0x40] sm:$0xff] %vm719_vm0, %v672_v20  ;;  %743 = vst.msk [vmem:[%s1984_s13 + $0xb8] sm:$0xff] %vm719_vm0, %v702_v21 }
 0x226   : > { %v704_v22 = vpop.xlane.xlu0 %703  ;;  %v674_v23 = vpop.xlane.xlu1 %673 }
 0x227   : > { %744 = vst.msk [vmem:[%s1984_s13 + $0xc0] sm:$0xff] %vm719_vm0, %v704_v22  ;;  %729 = vst.msk [vmem:[%s1984_s13 + $0x48] sm:$0xff] %vm719_vm0, %v674_v23 }
 0x22a   : > { %v676_v24 = vpop.xlane.xlu0 %675  ;;  %v706_v25 = vpop.xlane.xlu1 %705 }
 0x22b   : > { %730 = vst.msk [vmem:[%s1984_s13 + $0x50] sm:$0xff] %vm719_vm0, %v676_v24  ;;  %745 = vst.msk [vmem:[%s1984_s13 + $0xc8] sm:$0xff] %vm719_vm0, %v706_v25 }
 0x22e   : > { %v708_v26 = vpop.xlane.xlu0 %707  ;;  %v678_v27 = vpop.xlane.xlu1 %677 }
 0x22f   : > { %746 = vst.msk [vmem:[%s1984_s13 + $0xd0] sm:$0xff] %vm719_vm0, %v708_v26  ;;  %731 = vst.msk [vmem:[%s1984_s13 + $0x58] sm:$0xff] %vm719_vm0, %v678_v27 }
 0x232   : > { %v680_v28 = vpop.xlane.xlu0 %679  ;;  %v710_v29 = vpop.xlane.xlu1 %709 }
 0x233   : > { %732 = vst.msk [vmem:[%s1984_s13 + $0x60] sm:$0xff] %vm719_vm0, %v680_v28  ;;  %747 = vst.msk [vmem:[%s1984_s13 + $0xd8] sm:$0xff] %vm719_vm0, %v710_v29 }
 0x236   : > { %v712_v30 = vpop.xlane.xlu0 %711  ;;  %v682_v31 = vpop.xlane.xlu1 %681 }
 0x237   : > { %748 = vst.msk [vmem:[%s1984_s13 + $0xe0] sm:$0xff] %vm719_vm0, %v712_v30  ;;  %733 = vst.msk [vmem:[%s1984_s13 + $0x68] sm:$0xff] %vm719_vm0, %v682_v31 }
 0x23a   : > { %v684_v32 = vpop.xlane.xlu0 %683  ;;  %v714_v34 = vpop.xlane.xlu1 %713 }
 0x23b   : > { %734 = vst.msk [vmem:[%s1984_s13 + $0x70] sm:$0xff] %vm719_vm0, %v684_v32  ;;  %749 = vst.msk [vmem:[%s1984_s13 + $0xe8] sm:$0xff] %vm719_vm0, %v714_v34 }
 0x23e   : > { %v716_v35 = vpop.xlane.xlu0 %715  ;;  %v686_v36 = vpop.xlane.xlu1 %685 }
 0x23f   : > { %750 = vst.msk [vmem:[%s1984_s13 + $0xf0] sm:$0xff] %vm719_vm0, %v716_v35  ;;  %735 = vst.msk [vmem:[%s1984_s13 + $0x78] sm:$0xff] %vm719_vm0, %v686_v36  ;;  %758 = sbr.rel (!%p2212_p9) target bundleno = 628 (0x274), region = 52 }
 0x242   : > { %v718_v37 = vpop.xlane.xlu1 %717 }
 0x243   : > { %751 = vst.msk [vmem:[%s1984_s13 + $0xf8] sm:$0xff] %vm719_vm0, %v718_v37 }
 0x244   : > { %s2225_s18 = smov (!%p761_p12, %s760_s18), 32 }
 0x245   : > { %s1145_s29 = sshll.u32 %s2225_s18, 7 }
 0x246   : > { %p1148_p1 = scmp.eq.s32.totalorder %s1145_s29, 0 }
 0x247   : > { %s2063_s26 = sshrl.u32 (!%p1148_p1), %s2225_s18, 5 }
 0x248   : > { %769 = sbr.rel (%p1148_p1) target bundleno = 628 (0x274), region = 56  ;;  %p1149_p2 = scmp.le.s32.totalorder (!%p1148_p1), %s2063_s26, 0 }
 0x24d   : > { %1057 = sbr.rel (%p1149_p2) target bundleno = 611 (0x263), region = 137  ;;  %s2213_s19 = smov (!%p1149_p2), %s2057_s28 }
 0x24e   : > { %s2214_s30 = smov (!%p1149_p2), %s1984_s13  ;;  %s2072_s5 = smov (!%p1149_p2), 0  }
 0x24f   : > { %s2074_s8 = smov (!%p1149_p2), 0  }
 0x252 LB: >> { %v894_v38 = vld [vmem:[%s1577_s30] sm:$0xff]  ;;  %v896_v39 = vld [vmem:[%s1577_s30 + $0x8] sm:$0xff]  ;;  %v898_v40 = vld [vmem:[%s1577_s30 + $0x10] sm:$0xff]  ;;  %s958_s24 = sadd.s32 1, %s1581_s5  ;;  %s888_s8 = sadd.s32 1, %s1585_s8   ;;  %s1585_s8 = sphi %s2074_s8, %s888_s8   ;;  %s1581_s5 = sphi %s2072_s5, %s2217_s5   ;;  %s1577_s30 = sphi %s2214_s30, %s2216_s30   ;;  %s1573_s19 = sphi %s2213_s19, %s2215_s19  }
 0x253   : >> { %895 = vst [vmem:[%s1573_s19] sm:$0xff] %v894_v38  ;;  %897 = vst [vmem:[%s1573_s19 + $0x8] sm:$0xff] %v896_v39  ;;  %v900_v41 = vld [vmem:[%s1577_s30 + $0x18] sm:$0xff]  ;;  %v902_v42 = vld [vmem:[%s1577_s30 + $0x20] sm:$0xff]  ;;  %p959_p10 = scmp.ge.s32.totalorder %s958_s24, %s2063_s26  ;;  %p887_p3 = scmp.ge.s32.totalorder %s888_s8, %s2063_s26 }
 0x254   : >> { %899 = vst [vmem:[%s1573_s19 + $0x10] sm:$0xff] %v898_v40  ;;  %v904_v43 = vld [vmem:[%s1577_s30 + $0x28] sm:$0xff]  ;;  %901 = vst [vmem:[%s1573_s19 + $0x18] sm:$0xff] %v900_v41  ;;  %v906_v44 = vld [vmem:[%s1577_s30 + $0x30] sm:$0xff] }
 0x255   : >> { %903 = vst [vmem:[%s1573_s19 + $0x20] sm:$0xff] %v902_v42  ;;  %905 = vst [vmem:[%s1573_s19 + $0x28] sm:$0xff] %v904_v43  ;;  %v908_v45 = vld [vmem:[%s1577_s30 + $0x38] sm:$0xff]  ;;  %v910_v46 = vld [vmem:[%s1577_s30 + $0x40] sm:$0xff]  ;;  %s2227_s24 = smov (%p959_p10, %s958_s24), 0 }
 0x256   : >> { %907 = vst [vmem:[%s1573_s19 + $0x30] sm:$0xff] %v906_v44  ;;  %909 = vst [vmem:[%s1573_s19 + $0x38] sm:$0xff] %v908_v45  ;;  %v912_v47 = vld [vmem:[%s1577_s30 + $0x48] sm:$0xff]  ;;  %v914_v48 = vld [vmem:[%s1577_s30 + $0x50] sm:$0xff]  ;;  %s1150_s6 = sshll.u32 %s2227_s24, 8  ;;  %s2217_s5 = smov %s2227_s24 }
 0x257   : >> { %911 = vst [vmem:[%s1573_s19 + $0x40] sm:$0xff] %v910_v46  ;;  %v916_v49 = vld [vmem:[%s1577_s30 + $0x58] sm:$0xff]  ;;  %913 = vst [vmem:[%s1573_s19 + $0x48] sm:$0xff] %v912_v47  ;;  %v918_v50 = vld [vmem:[%s1577_s30 + $0x60] sm:$0xff]  ;;  %s2130_s7 = scalar_lea.vmem %s1984_s13, %s1150_s6 [#allocation7]   ;;  %s964_s27 = scalar_lea.vmem %s2057_s28, %s1150_s6  }
 0x258   : >> { %915 = vst [vmem:[%s1573_s19 + $0x50] sm:$0xff] %v914_v48  ;;  %917 = vst [vmem:[%s1573_s19 + $0x58] sm:$0xff] %v916_v49  ;;  %v920_v51 = vld [vmem:[%s1577_s30 + $0x68] sm:$0xff]  ;;  %v922_v52 = vld [vmem:[%s1577_s30 + $0x70] sm:$0xff] }
 0x259   : >> { %919 = vst [vmem:[%s1573_s19 + $0x60] sm:$0xff] %v918_v50  ;;  %921 = vst [vmem:[%s1573_s19 + $0x68] sm:$0xff] %v920_v51  ;;  %v924_v53 = vld [vmem:[%s1577_s30 + $0x78] sm:$0xff]  ;;  %v926_v54 = vld [vmem:[%s1577_s30 + $0x80] sm:$0xff] }
 0x25a   : >> { %923 = vst [vmem:[%s1573_s19 + $0x70] sm:$0xff] %v922_v52  ;;  %v928_v55 = vld [vmem:[%s1577_s30 + $0x88] sm:$0xff]  ;;  %925 = vst [vmem:[%s1573_s19 + $0x78] sm:$0xff] %v924_v53  ;;  %v930_v56 = vld [vmem:[%s1577_s30 + $0x90] sm:$0xff] }
 0x25b   : >> { %927 = vst [vmem:[%s1573_s19 + $0x80] sm:$0xff] %v926_v54  ;;  %929 = vst [vmem:[%s1573_s19 + $0x88] sm:$0xff] %v928_v55  ;;  %v932_v57 = vld [vmem:[%s1577_s30 + $0x98] sm:$0xff]  ;;  %v934_v59 = vld [vmem:[%s1577_s30 + $0xa0] sm:$0xff] }
 0x25c   : >> { %931 = vst [vmem:[%s1573_s19 + $0x90] sm:$0xff] %v930_v56  ;;  %933 = vst [vmem:[%s1573_s19 + $0x98] sm:$0xff] %v932_v57  ;;  %v936_v33 = vld [vmem:[%s1577_s30 + $0xa8] sm:$0xff]  ;;  %v938_v60 = vld [vmem:[%s1577_s30 + $0xb0] sm:$0xff] }
 0x25d   : >> { %935 = vst [vmem:[%s1573_s19 + $0xa0] sm:$0xff] %v934_v59  ;;  %v940_v61 = vld [vmem:[%s1577_s30 + $0xb8] sm:$0xff]  ;;  %937 = vst [vmem:[%s1573_s19 + $0xa8] sm:$0xff] %v936_v33  ;;  %v942_v62 = vld [vmem:[%s1577_s30 + $0xc0] sm:$0xff] }
 0x25e   : >> { %939 = vst [vmem:[%s1573_s19 + $0xb0] sm:$0xff] %v938_v60  ;;  %941 = vst [vmem:[%s1573_s19 + $0xb8] sm:$0xff] %v940_v61  ;;  %v944_v63 = vld [vmem:[%s1577_s30 + $0xc8] sm:$0xff]  ;;  %v946_v0 = vld [vmem:[%s1577_s30 + $0xd0] sm:$0xff]  ;;  %890 = sbr.rel (!%p887_p3) target bundleno = 594 (0x252), region = 143 }
 0x25f   : >> { %943 = vst [vmem:[%s1573_s19 + $0xc0] sm:$0xff] %v942_v62  ;;  %945 = vst [vmem:[%s1573_s19 + $0xc8] sm:$0xff] %v944_v63  ;;  %v948_v1 = vld [vmem:[%s1577_s30 + $0xd8] sm:$0xff]  ;;  %v950_v2 = vld [vmem:[%s1577_s30 + $0xe0] sm:$0xff] }
 0x260   : >> { %947 = vst [vmem:[%s1573_s19 + $0xd0] sm:$0xff] %v946_v0  ;;  %v952_v3 = vld [vmem:[%s1577_s30 + $0xe8] sm:$0xff]  ;;  %949 = vst [vmem:[%s1573_s19 + $0xd8] sm:$0xff] %v948_v1  ;;  %v954_v4 = vld [vmem:[%s1577_s30 + $0xf0] sm:$0xff] }
 0x261   : >> { %951 = vst [vmem:[%s1573_s19 + $0xe0] sm:$0xff] %v950_v2  ;;  %953 = vst [vmem:[%s1573_s19 + $0xe8] sm:$0xff] %v952_v3  ;;  %v956_v5 = vld [vmem:[%s1577_s30 + $0xf8] sm:$0xff]  ;;  %s2216_s30 = smov %s2130_s7 }
 0x262   : >> { %955 = vst [vmem:[%s1573_s19 + $0xf0] sm:$0xff] %v954_v4  ;;  %957 = vst [vmem:[%s1573_s19 + $0xf8] sm:$0xff] %v956_v5  ;;  %s2215_s19 = smov %s964_s27 }
 0x263 PF: > { %s2171_s9 = sand.u32 31, %s2225_s18   ;;  %s1164_s10 = sshll.u32 %s2063_s26, 8 }
 0x264   : > { %s969_s25 = scalar_lea.vmem %s1984_s13, %s1164_s10 [#allocation7]   ;;  %s971_s11 = scalar_lea.vmem %s2057_s28, %s1164_s10  }
 0x265   : > { %p1155_p4 = scmp.le.s32.totalorder %s2171_s9, 0 }
 0x266   : > { %s1587_s12 = smov (!%p1155_p4), %s971_s11   ;;  %s1591_s14 = smov (!%p1155_p4), %s969_s25  }
 0x267   : > { %1071 = sbr.rel (%p1155_p4) target bundleno = 628 (0x274), region = 148  ;;  %s1595_s15 = smov (!%p1155_p4), 0  }
 0x268   : > { %s1599_s21 = smov (!%p1155_p4), 0  }
 0x26c LB: >> { %v981_v6 = vld [vmem:[%s1593_s14] sm:$0xff]  ;;  %s983_s18 = sadd.s32 1, %s1597_s15  ;;  %s975_s21 = sadd.s32 1, %s1601_s21   ;;  %s1601_s21 = sphi %s1599_s21, %s975_s21   ;;  %s1597_s15 = sphi %s1595_s15, %s1596_s15   ;;  %s1593_s14 = sphi %s1591_s14, %s988_s14   ;;  %s1589_s12 = sphi %s1587_s12, %s989_s12  }
 0x26d   : >> { %982 = vst [vmem:[%s1589_s12] sm:$0xff] %v981_v6  ;;  %p984_p8 = scmp.ge.s32.totalorder %s983_s18, %s2171_s9  ;;  %p974_p11 = scmp.ge.s32.totalorder %s975_s21, %s2171_s9 }
 0x26f   : >> { %s2229_s18 = smov (%p984_p8, %s983_s18), 0  ;;  %977 = sbr.rel (!%p974_p11) target bundleno = 620 (0x26c), region = 154 }
 0x270   : >> { %s1156_s13 = sshll.u32 %s2229_s18, 3  ;;  %s1596_s15 = smov %s2229_s18  }
 0x271   : >> { %s988_s14 = scalar_lea.vmem %s969_s25, %s1156_s13 [#allocation7]   ;;  %s989_s12 = scalar_lea.vmem %s971_s11, %s1156_s13  }
 0x274 PF: > { %p13_p13 = scmp.ge.s32.totalorder %s1658_s20, 4   ;;  %s2218_s15 = smov %s1561_s16 }
 0x275   : > { %s2219_s16 = smov %s1565_s17  ;;  %s2220_s17 = smov %s1668_s23 }
 0x276   : > { %s2221_s18 = smov %s1658_s20  ;;  %15 = sbr.rel (!%p13_p13) target bundleno = 3 (0x3), region = 165 }
 0x27b   :  { %1005 = vsyncpa [#allocation3], 1 }
 0x27c   :  { %1007 = vsyncpa [#allocation3 + $0x1], 1 }
 0x27d   :  { %1008 = vsyncpa [#allocation5], 1 }

</bundles_post_ra>
